<compile_context>
chip_gen: v6e
topology: v6e:2x2x1
jax: 0.10.0
libtpu: 0.0.40
codegen_flags: <defaults>
</compile_context>

<pallas_src>
from functools import partial

import jax
import jax.numpy as jnp
import numpy as np
from jax import lax
from jax.experimental import pallas as pl
from jax.experimental.pallas import tpu as pltpu


# ----------------------------- Pallas kernel ------------------------------ #

def lstm_classifier_kernel(ids_ref, embproj_ref, b_ref, whh_ref, lens_ref,
                           fcw_ref, fcb_ref, out_ref):
    """Embedding gather + LSTM recurrence + classifier head, one invocation.

    ids_ref     : (T*B, 1) int32  token ids, time-major rows [t*B + b]
    embproj_ref : (Vp, 4H) f32    embeddings @ W_ih^T, gate cols [i, f, o, g]
    b_ref       : (1, 4H)  f32    b_ih + b_hh (same gate order)
    whh_ref     : (H, 4H)  f32    W_hh^T (same gate order)
    lens_ref    : (B, 1)   int32  sequence lengths
    fcw_ref     : (H, OP)  f32    fc1 weight^T, zero-padded to OP=128 lanes
    fcb_ref     : (1, OP)  f32    fc1 bias, zero-padded
    out_ref     : (B, OP)  f32    padded prediction (sliced to O outside)
    """
    TB = ids_ref.shape[0]
    Vp, H4 = embproj_ref.shape
    B = lens_ref.shape[0]
    H = H4 // 4
    T = TB // B

    # In-kernel embedding lookup fused with the hoisted input projection:
    #   Z_in = onehot(ids) @ (E_table @ W_ih^T) + b   -- one MXU matmul.
    ids = ids_ref[...]                                        # (TB, 1) int32
    vocab_iota = lax.broadcasted_iota(jnp.int32, (TB, Vp), 1)
    one_hot = (vocab_iota == ids).astype(jnp.float32)         # (TB, Vp)
    zin = (jnp.dot(one_hot, embproj_ref[...],
                   preferred_element_type=jnp.float32)
           + b_ref[...])                                      # (TB, 4H) value

    whh = whh_ref[...]                                        # (H, 4H), resident
    lens_b = jnp.broadcast_to(lens_ref[...], (B, H))          # hoisted mask operand

    h = jnp.zeros((B, H), jnp.float32)
    c = jnp.zeros((B, H), jnp.float32)

    # Fully unrolled serial recurrence (T is small); static slices everywhere.
    for t in range(T):
        z = (zin[t * B:(t + 1) * B, :]
             + jnp.dot(h, whh, preferred_element_type=jnp.float32))  # (B, 4H)

        sg = jax.nn.sigmoid(z[:, :3 * H])     # gates [i | f | o], offset-0 slice
        g = jnp.tanh(z[:, 3 * H:])            # gate g
        i_g = sg[:, :H]                       # lanes 0..H-1, no realignment
        f_g = sg[:, H:2 * H]
        o_g = sg[:, 2 * H:3 * H]

        c_new = f_g * c + i_g * g
        h_new = o_g * jnp.tanh(c_new)

        # packed-sequence semantics: finished sequences keep their state.
        keep = lens_b > t                     # (B, H), no in-loop broadcast
        h = jnp.where(keep, h_new, h)
        c = jnp.where(keep, c_new, c)

    # Fused classifier head: (B, H) @ (H, OP) + (1, OP), lane-dense store.
    out_ref[...] = (jnp.dot(h, fcw_ref[...], preferred_element_type=jnp.float32)
                    + fcb_ref[...])


# ------------------------- one-time parameter prep ------------------------- #

def prepare_params(params, out_pad=128):
    """Run ONCE at init: all transposes / permutations / padding / foldings."""
    H = params["w_hh"].shape[1]
    O = params["fc_w"].shape[0]
    V = params["embeddings"].shape[0]
    Vp = ((V + 7) // 8) * 8                   # pad vocab rows to sublane multiple

    # PyTorch gate order is [i, f, g, o]; permute columns to [i, f, o, g] so the
    # kernel's sigmoid covers a contiguous offset-0 lane range.
    perm = np.concatenate([np.arange(0, H), np.arange(H, 2 * H),
                           np.arange(3 * H, 4 * H), np.arange(2 * H, 3 * H)])

    emb_proj = (params["embeddings"].astype(jnp.float32)
                @ params["w_ih"].T.astype(jnp.float32))[:, perm]      # (V, 4H)
    emb_proj = jnp.zeros((Vp, 4 * H), jnp.float32).at[:V, :].set(emb_proj)

    bias = (params["b_ih"] + params["b_hh"])[perm][None, :].astype(jnp.float32)
    whh = params["w_hh"].T.astype(jnp.float32)[:, perm]               # (H, 4H)

    fcw = jnp.zeros((H, out_pad), jnp.float32).at[:, :O].set(
        params["fc_w"].T.astype(jnp.float32))
    fcb = jnp.zeros((1, out_pad), jnp.float32).at[:, :O].set(
        params["fc_b"][None, :].astype(jnp.float32))

    return {"emb_proj": emb_proj, "bias": bias, "whh": whh,
            "fcw": fcw, "fcb": fcb}


# ------------------------------ forward call ------------------------------- #

@partial(jax.jit, static_argnames=("out_size",))
def review_classifier_forward(text, text_lengths, prepped, *, out_size):
    T, B = text.shape
    Vp, H4 = prepped["emb_proj"].shape
    H = H4 // 4
    OP = prepped["fcw"].shape[1]

    ids = text.reshape(T * B, 1).astype(jnp.int32)           # tiny per-call glue
    lens = text_lengths.astype(jnp.int32).reshape(B, 1)

    grid_spec = pltpu.PrefetchScalarGridSpec(
        num_scalar_prefetch=0,
        grid=(1,),
        in_specs=[
            pl.BlockSpec((T * B, 1), lambda i: (0, 0)),      # token ids
            pl.BlockSpec((Vp, H4), lambda i: (0, 0)),        # embeddings @ W_ih^T
            pl.BlockSpec((1, H4), lambda i: (0, 0)),         # fused bias
            pl.BlockSpec((H, H4), lambda i: (0, 0)),         # W_hh^T
            pl.BlockSpec((B, 1), lambda i: (0, 0)),          # lengths
            pl.BlockSpec((H, OP), lambda i: (0, 0)),         # fc W^T (padded)
            pl.BlockSpec((1, OP), lambda i: (0, 0)),         # fc bias (padded)
        ],
        out_specs=pl.BlockSpec((B, OP), lambda i: (0, 0)),
    )

    cost = pl.CostEstimate(
        flops=2 * T * B * Vp * H4 + T * 2 * B * H * H4 + 2 * B * H * OP,
        transcendentals=T * B * 5 * H,
        bytes_accessed=4 * (T * B + Vp * H4 + H4 + H * H4 + B
                            + H * OP + OP + B * OP),
    )

    out_padded = pl.pallas_call(
        lstm_classifier_kernel,
        out_shape=jax.ShapeDtypeStruct((B, OP), jnp.float32),
        grid_spec=grid_spec,
        compiler_params=pltpu.CompilerParams(
            dimension_semantics=("arbitrary",)),   # single sequential step
        cost_estimate=cost,
    )(ids, prepped["emb_proj"], prepped["bias"], prepped["whh"], lens,
      prepped["fcw"], prepped["fcb"])

    return out_padded[:, :out_size]


# ----------------------------- JAX reference ------------------------------ #

def review_classifier_ref(text, text_lengths, params):
    emb = jnp.take(params["embeddings"], text, axis=0)   # (T, B, E)
    T, B, _ = emb.shape
    H = params["w_hh"].shape[1]

    def step(carry, inp):
        h, c = carry
        x_t, t = inp
        z = (x_t @ params["w_ih"].T + h @ params["w_hh"].T
             + params["b_ih"] + params["b_hh"])
        i = jax.nn.sigmoid(z[:, :H])
        f = jax.nn.sigmoid(z[:, H:2 * H])
        g = jnp.tanh(z[:, 2 * H:3 * H])
        o = jax.nn.sigmoid(z[:, 3 * H:])
        c_new = f * c + i * g
        h_new = o * jnp.tanh(c_new)
        m = (t < text_lengths)[:, None]
        return (jnp.where(m, h_new, h), jnp.where(m, c_new, c)), None

    init = (jnp.zeros((B, H), jnp.float32), jnp.zeros((B, H), jnp.float32))
    (h_n, _), _ = lax.scan(step, init, (emb, jnp.arange(T)))
    return h_n @ params["fc_w"].T + params["fc_b"]


# --------------------------------- main ------------------------------------ #

if __name__ == "__main__":
    # Small shapes consistent with the module's forward:
    #   seq T=8, batch B=8, vocab V=50, embedding E=32, hidden H=32, output O=5
    T, B, V, E, H, O = 8, 8, 50, 32, 32, 5

    key = jax.random.PRNGKey(0)
    keys = jax.random.split(key, 8)

    params = {
        # word_embeddings (frozen pretrained vectors in the original module)
        "embeddings": jax.random.normal(keys[0], (V, E), jnp.float32) * 0.5,
        "w_ih": jax.random.normal(keys[1], (4 * H, E), jnp.float32) * 0.1,
        "w_hh": jax.random.normal(keys[2], (4 * H, H), jnp.float32) * 0.1,
        "b_ih": jax.random.normal(keys[3], (4 * H,), jnp.float32) * 0.1,
        "b_hh": jax.random.normal(keys[4], (4 * H,), jnp.float32) * 0.1,
        "fc_w": jax.random.normal(keys[5], (O, H), jnp.float32) * 0.1,
        "fc_b": jax.random.normal(keys[6], (O,), jnp.float32) * 0.1,
    }

    # One-time init-side prep (item 1 of the review).
    prepped = prepare_params(params)

    # text: (T, B) token ids; lengths sorted descending (pack_padded_sequence
    # with enforce_sorted=True), each >= 1 and <= T.
    text = jax.random.randint(keys[7], (T, B), 0, V, dtype=jnp.int32)
    text_lengths = jnp.array(sorted(
        [T, T - 1, T - 2, T - 3, 5, 4, 3, 2], reverse=True), dtype=jnp.int32)

    out = review_classifier_forward(text, text_lengths, prepped, out_size=O)
    out = jax.block_until_ready(out)

    ref = jax.block_until_ready(review_classifier_ref(text, text_lengths, params))
    np.testing.assert_allclose(np.asarray(out), np.asarray(ref),
                               rtol=2e-2, atol=2e-2)

    print("KERNEL_OK")
</pallas_src>

<mosaic_0001>
module attributes {stable_mosaic.version = 11 : i64} {
  func.func @lstm_classifier_kernel(%arg0: i32, %arg1: memref<64x1xi32, #tpu.memory_space<vmem>>, %arg2: memref<56x128xf32, #tpu.memory_space<vmem>>, %arg3: memref<1x128xf32, #tpu.memory_space<vmem>>, %arg4: memref<32x128xf32, #tpu.memory_space<vmem>>, %arg5: memref<8x1xi32, #tpu.memory_space<vmem>>, %arg6: memref<32x128xf32, #tpu.memory_space<vmem>>, %arg7: memref<1x128xf32, #tpu.memory_space<vmem>>, %arg8: memref<8x128xf32, #tpu.memory_space<vmem>>) attributes {dimension_semantics = [#tpu.dimension_semantics<arbitrary>], iteration_bounds = array<i64: 1>, scalar_prefetch = 0 : i64, scratch_operands = 0 : i64, tpu.core_type = #tpu.core_type<tc>, window_params = [{pipeline_mode = #tpu.pipeline_mode<synchronous>, transform_indices = @transform_0, window_bounds = array<i64: 64, 1>}, {pipeline_mode = #tpu.pipeline_mode<synchronous>, transform_indices = @transform_1, window_bounds = array<i64: 56, 128>}, {pipeline_mode = #tpu.pipeline_mode<synchronous>, transform_indices = @transform_2, window_bounds = array<i64: 1, 128>}, {pipeline_mode = #tpu.pipeline_mode<synchronous>, transform_indices = @transform_3, window_bounds = array<i64: 32, 128>}, {pipeline_mode = #tpu.pipeline_mode<synchronous>, transform_indices = @transform_4, window_bounds = array<i64: 8, 1>}, {pipeline_mode = #tpu.pipeline_mode<synchronous>, transform_indices = @transform_5, window_bounds = array<i64: 32, 128>}, {pipeline_mode = #tpu.pipeline_mode<synchronous>, transform_indices = @transform_6, window_bounds = array<i64: 1, 128>}, {pipeline_mode = #tpu.pipeline_mode<synchronous>, transform_indices = @transform_7, window_bounds = array<i64: 8, 128>}]} {
    %c0 = arith.constant 0 : index
    %c0_0 = arith.constant 0 : index
    %0 = vector.load %arg1[%c0, %c0_0] : memref<64x1xi32, #tpu.memory_space<vmem>>, vector<64x1xi32>
    %1 = tpu.iota {dimensions = array<i32: 1>} : vector<64x56xi32>
    %2 = vector.broadcast %0 : vector<64x1xi32> to vector<64x56xi32>
    %3 = arith.cmpi eq, %1, %2 : vector<64x56xi32>
    %4 = arith.extui %3 : vector<64x56xi1> to vector<64x56xi32>
    %5 = arith.sitofp %4 : vector<64x56xi32> to vector<64x56xf32>
    %c0_1 = arith.constant 0 : index
    %c0_2 = arith.constant 0 : index
    %6 = vector.load %arg2[%c0_1, %c0_2] : memref<56x128xf32, #tpu.memory_space<vmem>>, vector<56x128xf32>
    %cst = arith.constant dense<0.000000e+00> : vector<64x128xf32>
    %7 = tpu.matmul %5, %6, %cst {dimension_numbers = #tpu.dot_dimension_numbers<[1], [0], [0], [1], [0, 0, 1, 1], [], []>} : vector<64x56xf32>, vector<56x128xf32>, vector<64x128xf32> -> vector<64x128xf32>
    %c0_3 = arith.constant 0 : index
    %c0_4 = arith.constant 0 : index
    %8 = vector.load %arg3[%c0_3, %c0_4] : memref<1x128xf32, #tpu.memory_space<vmem>>, vector<1x128xf32>
    %9 = vector.broadcast %8 : vector<1x128xf32> to vector<64x128xf32>
    %10 = arith.addf %7, %9 : vector<64x128xf32>
    %c0_5 = arith.constant 0 : index
    %c0_6 = arith.constant 0 : index
    %11 = vector.load %arg4[%c0_5, %c0_6] : memref<32x128xf32, #tpu.memory_space<vmem>>, vector<32x128xf32>
    %c0_7 = arith.constant 0 : index
    %c0_8 = arith.constant 0 : index
    %12 = vector.load %arg5[%c0_7, %c0_8] : memref<8x1xi32, #tpu.memory_space<vmem>>, vector<8x1xi32>
    %13 = vector.shape_cast %12 : vector<8x1xi32> to vector<8x1xi32>
    %14 = vector.broadcast %13 : vector<8x1xi32> to vector<8x32xi32>
    %cst_9 = arith.constant 0.000000e+00 : f32
    %15 = vector.broadcast %cst_9 : f32 to vector<8x32xf32>
    %cst_10 = arith.constant 0.000000e+00 : f32
    %16 = vector.broadcast %cst_10 : f32 to vector<8x32xf32>
    %17 = vector.extract_strided_slice %10 {offsets = [0, 0], sizes = [8, 128], strides = [1, 1]} : vector<64x128xf32> to vector<8x128xf32>
    %cst_11 = arith.constant dense<0.000000e+00> : vector<8x128xf32>
    %18 = tpu.matmul %15, %11, %cst_11 {dimension_numbers = #tpu.dot_dimension_numbers<[1], [0], [0], [1], [0, 0, 1, 1], [], []>} : vector<8x32xf32>, vector<32x128xf32>, vector<8x128xf32> -> vector<8x128xf32>
    %19 = arith.addf %17, %18 : vector<8x128xf32>
    %20 = vector.extract_strided_slice %19 {offsets = [0, 0], sizes = [8, 96], strides = [1, 1]} : vector<8x128xf32> to vector<8x96xf32>
    %21 = arith.negf %20 : vector<8x96xf32>
    %22 = math.exp %21 : vector<8x96xf32>
    %cst_12 = arith.constant 1.000000e+00 : f32
    %23 = vector.broadcast %cst_12 : f32 to vector<8x96xf32>
    %24 = arith.addf %23, %22 : vector<8x96xf32>
    %25 = arith.divf %23, %24 : vector<8x96xf32>
    %26 = vector.extract_strided_slice %19 {offsets = [0, 96], sizes = [8, 32], strides = [1, 1]} : vector<8x128xf32> to vector<8x32xf32>
    %27 = math.tanh %26 : vector<8x32xf32>
    %28 = vector.extract_strided_slice %25 {offsets = [0, 0], sizes = [8, 32], strides = [1, 1]} : vector<8x96xf32> to vector<8x32xf32>
    %29 = vector.extract_strided_slice %25 {offsets = [0, 32], sizes = [8, 32], strides = [1, 1]} : vector<8x96xf32> to vector<8x32xf32>
    %30 = vector.extract_strided_slice %25 {offsets = [0, 64], sizes = [8, 32], strides = [1, 1]} : vector<8x96xf32> to vector<8x32xf32>
    %31 = arith.mulf %29, %16 : vector<8x32xf32>
    %32 = arith.mulf %28, %27 : vector<8x32xf32>
    %33 = arith.addf %31, %32 : vector<8x32xf32>
    %34 = math.tanh %33 : vector<8x32xf32>
    %35 = arith.mulf %30, %34 : vector<8x32xf32>
    %c0_i32 = arith.constant 0 : i32
    %36 = vector.broadcast %c0_i32 : i32 to vector<8x32xi32>
    %37 = arith.cmpi sgt, %14, %36 : vector<8x32xi32>
    %38 = arith.select %37, %35, %15 : vector<8x32xi1>, vector<8x32xf32>
    %39 = arith.select %37, %33, %16 : vector<8x32xi1>, vector<8x32xf32>
    %40 = vector.extract_strided_slice %10 {offsets = [8, 0], sizes = [8, 128], strides = [1, 1]} : vector<64x128xf32> to vector<8x128xf32>
    %cst_13 = arith.constant dense<0.000000e+00> : vector<8x128xf32>
    %41 = tpu.matmul %38, %11, %cst_13 {dimension_numbers = #tpu.dot_dimension_numbers<[1], [0], [0], [1], [0, 0, 1, 1], [], []>} : vector<8x32xf32>, vector<32x128xf32>, vector<8x128xf32> -> vector<8x128xf32>
    %42 = arith.addf %40, %41 : vector<8x128xf32>
    %43 = vector.extract_strided_slice %42 {offsets = [0, 0], sizes = [8, 96], strides = [1, 1]} : vector<8x128xf32> to vector<8x96xf32>
    %44 = arith.negf %43 : vector<8x96xf32>
    %45 = math.exp %44 : vector<8x96xf32>
    %cst_14 = arith.constant 1.000000e+00 : f32
    %46 = vector.broadcast %cst_14 : f32 to vector<8x96xf32>
    %47 = arith.addf %46, %45 : vector<8x96xf32>
    %48 = arith.divf %46, %47 : vector<8x96xf32>
    %49 = vector.extract_strided_slice %42 {offsets = [0, 96], sizes = [8, 32], strides = [1, 1]} : vector<8x128xf32> to vector<8x32xf32>
    %50 = math.tanh %49 : vector<8x32xf32>
    %51 = vector.extract_strided_slice %48 {offsets = [0, 0], sizes = [8, 32], strides = [1, 1]} : vector<8x96xf32> to vector<8x32xf32>
    %52 = vector.extract_strided_slice %48 {offsets = [0, 32], sizes = [8, 32], strides = [1, 1]} : vector<8x96xf32> to vector<8x32xf32>
    %53 = vector.extract_strided_slice %48 {offsets = [0, 64], sizes = [8, 32], strides = [1, 1]} : vector<8x96xf32> to vector<8x32xf32>
    %54 = arith.mulf %52, %39 : vector<8x32xf32>
    %55 = arith.mulf %51, %50 : vector<8x32xf32>
    %56 = arith.addf %54, %55 : vector<8x32xf32>
    %57 = math.tanh %56 : vector<8x32xf32>
    %58 = arith.mulf %53, %57 : vector<8x32xf32>
    %c1_i32 = arith.constant 1 : i32
    %59 = vector.broadcast %c1_i32 : i32 to vector<8x32xi32>
    %60 = arith.cmpi sgt, %14, %59 : vector<8x32xi32>
    %61 = arith.select %60, %58, %38 : vector<8x32xi1>, vector<8x32xf32>
    %62 = arith.select %60, %56, %39 : vector<8x32xi1>, vector<8x32xf32>
    %63 = vector.extract_strided_slice %10 {offsets = [16, 0], sizes = [8, 128], strides = [1, 1]} : vector<64x128xf32> to vector<8x128xf32>
    %cst_15 = arith.constant dense<0.000000e+00> : vector<8x128xf32>
    %64 = tpu.matmul %61, %11, %cst_15 {dimension_numbers = #tpu.dot_dimension_numbers<[1], [0], [0], [1], [0, 0, 1, 1], [], []>} : vector<8x32xf32>, vector<32x128xf32>, vector<8x128xf32> -> vector<8x128xf32>
    %65 = arith.addf %63, %64 : vector<8x128xf32>
    %66 = vector.extract_strided_slice %65 {offsets = [0, 0], sizes = [8, 96], strides = [1, 1]} : vector<8x128xf32> to vector<8x96xf32>
    %67 = arith.negf %66 : vector<8x96xf32>
    %68 = math.exp %67 : vector<8x96xf32>
    %cst_16 = arith.constant 1.000000e+00 : f32
    %69 = vector.broadcast %cst_16 : f32 to vector<8x96xf32>
    %70 = arith.addf %69, %68 : vector<8x96xf32>
    %71 = arith.divf %69, %70 : vector<8x96xf32>
    %72 = vector.extract_strided_slice %65 {offsets = [0, 96], sizes = [8, 32], strides = [1, 1]} : vector<8x128xf32> to vector<8x32xf32>
    %73 = math.tanh %72 : vector<8x32xf32>
    %74 = vector.extract_strided_slice %71 {offsets = [0, 0], sizes = [8, 32], strides = [1, 1]} : vector<8x96xf32> to vector<8x32xf32>
    %75 = vector.extract_strided_slice %71 {offsets = [0, 32], sizes = [8, 32], strides = [1, 1]} : vector<8x96xf32> to vector<8x32xf32>
    %76 = vector.extract_strided_slice %71 {offsets = [0, 64], sizes = [8, 32], strides = [1, 1]} : vector<8x96xf32> to vector<8x32xf32>
    %77 = arith.mulf %75, %62 : vector<8x32xf32>
    %78 = arith.mulf %74, %73 : vector<8x32xf32>
    %79 = arith.addf %77, %78 : vector<8x32xf32>
    %80 = math.tanh %79 : vector<8x32xf32>
    %81 = arith.mulf %76, %80 : vector<8x32xf32>
    %c2_i32 = arith.constant 2 : i32
    %82 = vector.broadcast %c2_i32 : i32 to vector<8x32xi32>
    %83 = arith.cmpi sgt, %14, %82 : vector<8x32xi32>
    %84 = arith.select %83, %81, %61 : vector<8x32xi1>, vector<8x32xf32>
    %85 = arith.select %83, %79, %62 : vector<8x32xi1>, vector<8x32xf32>
    %86 = vector.extract_strided_slice %10 {offsets = [24, 0], sizes = [8, 128], strides = [1, 1]} : vector<64x128xf32> to vector<8x128xf32>
    %cst_17 = arith.constant dense<0.000000e+00> : vector<8x128xf32>
    %87 = tpu.matmul %84, %11, %cst_17 {dimension_numbers = #tpu.dot_dimension_numbers<[1], [0], [0], [1], [0, 0, 1, 1], [], []>} : vector<8x32xf32>, vector<32x128xf32>, vector<8x128xf32> -> vector<8x128xf32>
    %88 = arith.addf %86, %87 : vector<8x128xf32>
    %89 = vector.extract_strided_slice %88 {offsets = [0, 0], sizes = [8, 96], strides = [1, 1]} : vector<8x128xf32> to vector<8x96xf32>
    %90 = arith.negf %89 : vector<8x96xf32>
    %91 = math.exp %90 : vector<8x96xf32>
    %cst_18 = arith.constant 1.000000e+00 : f32
    %92 = vector.broadcast %cst_18 : f32 to vector<8x96xf32>
    %93 = arith.addf %92, %91 : vector<8x96xf32>
    %94 = arith.divf %92, %93 : vector<8x96xf32>
    %95 = vector.extract_strided_slice %88 {offsets = [0, 96], sizes = [8, 32], strides = [1, 1]} : vector<8x128xf32> to vector<8x32xf32>
    %96 = math.tanh %95 : vector<8x32xf32>
    %97 = vector.extract_strided_slice %94 {offsets = [0, 0], sizes = [8, 32], strides = [1, 1]} : vector<8x96xf32> to vector<8x32xf32>
    %98 = vector.extract_strided_slice %94 {offsets = [0, 32], sizes = [8, 32], strides = [1, 1]} : vector<8x96xf32> to vector<8x32xf32>
    %99 = vector.extract_strided_slice %94 {offsets = [0, 64], sizes = [8, 32], strides = [1, 1]} : vector<8x96xf32> to vector<8x32xf32>
    %100 = arith.mulf %98, %85 : vector<8x32xf32>
    %101 = arith.mulf %97, %96 : vector<8x32xf32>
    %102 = arith.addf %100, %101 : vector<8x32xf32>
    %103 = math.tanh %102 : vector<8x32xf32>
    %104 = arith.mulf %99, %103 : vector<8x32xf32>
    %c3_i32 = arith.constant 3 : i32
    %105 = vector.broadcast %c3_i32 : i32 to vector<8x32xi32>
    %106 = arith.cmpi sgt, %14, %105 : vector<8x32xi32>
    %107 = arith.select %106, %104, %84 : vector<8x32xi1>, vector<8x32xf32>
    %108 = arith.select %106, %102, %85 : vector<8x32xi1>, vector<8x32xf32>
    %109 = vector.extract_strided_slice %10 {offsets = [32, 0], sizes = [8, 128], strides = [1, 1]} : vector<64x128xf32> to vector<8x128xf32>
    %cst_19 = arith.constant dense<0.000000e+00> : vector<8x128xf32>
    %110 = tpu.matmul %107, %11, %cst_19 {dimension_numbers = #tpu.dot_dimension_numbers<[1], [0], [0], [1], [0, 0, 1, 1], [], []>} : vector<8x32xf32>, vector<32x128xf32>, vector<8x128xf32> -> vector<8x128xf32>
    %111 = arith.addf %109, %110 : vector<8x128xf32>
    %112 = vector.extract_strided_slice %111 {offsets = [0, 0], sizes = [8, 96], strides = [1, 1]} : vector<8x128xf32> to vector<8x96xf32>
    %113 = arith.negf %112 : vector<8x96xf32>
    %114 = math.exp %113 : vector<8x96xf32>
    %cst_20 = arith.constant 1.000000e+00 : f32
    %115 = vector.broadcast %cst_20 : f32 to vector<8x96xf32>
    %116 = arith.addf %115, %114 : vector<8x96xf32>
    %117 = arith.divf %115, %116 : vector<8x96xf32>
    %118 = vector.extract_strided_slice %111 {offsets = [0, 96], sizes = [8, 32], strides = [1, 1]} : vector<8x128xf32> to vector<8x32xf32>
    %119 = math.tanh %118 : vector<8x32xf32>
    %120 = vector.extract_strided_slice %117 {offsets = [0, 0], sizes = [8, 32], strides = [1, 1]} : vector<8x96xf32> to vector<8x32xf32>
    %121 = vector.extract_strided_slice %117 {offsets = [0, 32], sizes = [8, 32], strides = [1, 1]} : vector<8x96xf32> to vector<8x32xf32>
    %122 = vector.extract_strided_slice %117 {offsets = [0, 64], sizes = [8, 32], strides = [1, 1]} : vector<8x96xf32> to vector<8x32xf32>
    %123 = arith.mulf %121, %108 : vector<8x32xf32>
    %124 = arith.mulf %120, %119 : vector<8x32xf32>
    %125 = arith.addf %123, %124 : vector<8x32xf32>
    %126 = math.tanh %125 : vector<8x32xf32>
    %127 = arith.mulf %122, %126 : vector<8x32xf32>
    %c4_i32 = arith.constant 4 : i32
    %128 = vector.broadcast %c4_i32 : i32 to vector<8x32xi32>
    %129 = arith.cmpi sgt, %14, %128 : vector<8x32xi32>
    %130 = arith.select %129, %127, %107 : vector<8x32xi1>, vector<8x32xf32>
    %131 = arith.select %129, %125, %108 : vector<8x32xi1>, vector<8x32xf32>
    %132 = vector.extract_strided_slice %10 {offsets = [40, 0], sizes = [8, 128], strides = [1, 1]} : vector<64x128xf32> to vector<8x128xf32>
    %cst_21 = arith.constant dense<0.000000e+00> : vector<8x128xf32>
    %133 = tpu.matmul %130, %11, %cst_21 {dimension_numbers = #tpu.dot_dimension_numbers<[1], [0], [0], [1], [0, 0, 1, 1], [], []>} : vector<8x32xf32>, vector<32x128xf32>, vector<8x128xf32> -> vector<8x128xf32>
    %134 = arith.addf %132, %133 : vector<8x128xf32>
    %135 = vector.extract_strided_slice %134 {offsets = [0, 0], sizes = [8, 96], strides = [1, 1]} : vector<8x128xf32> to vector<8x96xf32>
    %136 = arith.negf %135 : vector<8x96xf32>
    %137 = math.exp %136 : vector<8x96xf32>
    %cst_22 = arith.constant 1.000000e+00 : f32
    %138 = vector.broadcast %cst_22 : f32 to vector<8x96xf32>
    %139 = arith.addf %138, %137 : vector<8x96xf32>
    %140 = arith.divf %138, %139 : vector<8x96xf32>
    %141 = vector.extract_strided_slice %134 {offsets = [0, 96], sizes = [8, 32], strides = [1, 1]} : vector<8x128xf32> to vector<8x32xf32>
    %142 = math.tanh %141 : vector<8x32xf32>
    %143 = vector.extract_strided_slice %140 {offsets = [0, 0], sizes = [8, 32], strides = [1, 1]} : vector<8x96xf32> to vector<8x32xf32>
    %144 = vector.extract_strided_slice %140 {offsets = [0, 32], sizes = [8, 32], strides = [1, 1]} : vector<8x96xf32> to vector<8x32xf32>
    %145 = vector.extract_strided_slice %140 {offsets = [0, 64], sizes = [8, 32], strides = [1, 1]} : vector<8x96xf32> to vector<8x32xf32>
    %146 = arith.mulf %144, %131 : vector<8x32xf32>
    %147 = arith.mulf %143, %142 : vector<8x32xf32>
    %148 = arith.addf %146, %147 : vector<8x32xf32>
    %149 = math.tanh %148 : vector<8x32xf32>
    %150 = arith.mulf %145, %149 : vector<8x32xf32>
    %c5_i32 = arith.constant 5 : i32
    %151 = vector.broadcast %c5_i32 : i32 to vector<8x32xi32>
    %152 = arith.cmpi sgt, %14, %151 : vector<8x32xi32>
    %153 = arith.select %152, %150, %130 : vector<8x32xi1>, vector<8x32xf32>
    %154 = arith.select %152, %148, %131 : vector<8x32xi1>, vector<8x32xf32>
    %155 = vector.extract_strided_slice %10 {offsets = [48, 0], sizes = [8, 128], strides = [1, 1]} : vector<64x128xf32> to vector<8x128xf32>
    %cst_23 = arith.constant dense<0.000000e+00> : vector<8x128xf32>
    %156 = tpu.matmul %153, %11, %cst_23 {dimension_numbers = #tpu.dot_dimension_numbers<[1], [0], [0], [1], [0, 0, 1, 1], [], []>} : vector<8x32xf32>, vector<32x128xf32>, vector<8x128xf32> -> vector<8x128xf32>
    %157 = arith.addf %155, %156 : vector<8x128xf32>
    %158 = vector.extract_strided_slice %157 {offsets = [0, 0], sizes = [8, 96], strides = [1, 1]} : vector<8x128xf32> to vector<8x96xf32>
    %159 = arith.negf %158 : vector<8x96xf32>
    %160 = math.exp %159 : vector<8x96xf32>
    %cst_24 = arith.constant 1.000000e+00 : f32
    %161 = vector.broadcast %cst_24 : f32 to vector<8x96xf32>
    %162 = arith.addf %161, %160 : vector<8x96xf32>
    %163 = arith.divf %161, %162 : vector<8x96xf32>
    %164 = vector.extract_strided_slice %157 {offsets = [0, 96], sizes = [8, 32], strides = [1, 1]} : vector<8x128xf32> to vector<8x32xf32>
    %165 = math.tanh %164 : vector<8x32xf32>
    %166 = vector.extract_strided_slice %163 {offsets = [0, 0], sizes = [8, 32], strides = [1, 1]} : vector<8x96xf32> to vector<8x32xf32>
    %167 = vector.extract_strided_slice %163 {offsets = [0, 32], sizes = [8, 32], strides = [1, 1]} : vector<8x96xf32> to vector<8x32xf32>
    %168 = vector.extract_strided_slice %163 {offsets = [0, 64], sizes = [8, 32], strides = [1, 1]} : vector<8x96xf32> to vector<8x32xf32>
    %169 = arith.mulf %167, %154 : vector<8x32xf32>
    %170 = arith.mulf %166, %165 : vector<8x32xf32>
    %171 = arith.addf %169, %170 : vector<8x32xf32>
    %172 = math.tanh %171 : vector<8x32xf32>
    %173 = arith.mulf %168, %172 : vector<8x32xf32>
    %c6_i32 = arith.constant 6 : i32
    %174 = vector.broadcast %c6_i32 : i32 to vector<8x32xi32>
    %175 = arith.cmpi sgt, %14, %174 : vector<8x32xi32>
    %176 = arith.select %175, %173, %153 : vector<8x32xi1>, vector<8x32xf32>
    %177 = arith.select %175, %171, %154 : vector<8x32xi1>, vector<8x32xf32>
    %178 = vector.extract_strided_slice %10 {offsets = [56, 0], sizes = [8, 128], strides = [1, 1]} : vector<64x128xf32> to vector<8x128xf32>
    %cst_25 = arith.constant dense<0.000000e+00> : vector<8x128xf32>
    %179 = tpu.matmul %176, %11, %cst_25 {dimension_numbers = #tpu.dot_dimension_numbers<[1], [0], [0], [1], [0, 0, 1, 1], [], []>} : vector<8x32xf32>, vector<32x128xf32>, vector<8x128xf32> -> vector<8x128xf32>
    %180 = arith.addf %178, %179 : vector<8x128xf32>
    %181 = vector.extract_strided_slice %180 {offsets = [0, 0], sizes = [8, 96], strides = [1, 1]} : vector<8x128xf32> to vector<8x96xf32>
    %182 = arith.negf %181 : vector<8x96xf32>
    %183 = math.exp %182 : vector<8x96xf32>
    %cst_26 = arith.constant 1.000000e+00 : f32
    %184 = vector.broadcast %cst_26 : f32 to vector<8x96xf32>
    %185 = arith.addf %184, %183 : vector<8x96xf32>
    %186 = arith.divf %184, %185 : vector<8x96xf32>
    %187 = vector.extract_strided_slice %180 {offsets = [0, 96], sizes = [8, 32], strides = [1, 1]} : vector<8x128xf32> to vector<8x32xf32>
    %188 = math.tanh %187 : vector<8x32xf32>
    %189 = vector.extract_strided_slice %186 {offsets = [0, 0], sizes = [8, 32], strides = [1, 1]} : vector<8x96xf32> to vector<8x32xf32>
    %190 = vector.extract_strided_slice %186 {offsets = [0, 32], sizes = [8, 32], strides = [1, 1]} : vector<8x96xf32> to vector<8x32xf32>
    %191 = vector.extract_strided_slice %186 {offsets = [0, 64], sizes = [8, 32], strides = [1, 1]} : vector<8x96xf32> to vector<8x32xf32>
    %192 = arith.mulf %190, %177 : vector<8x32xf32>
    %193 = arith.mulf %189, %188 : vector<8x32xf32>
    %194 = arith.addf %192, %193 : vector<8x32xf32>
    %195 = math.tanh %194 : vector<8x32xf32>
    %196 = arith.mulf %191, %195 : vector<8x32xf32>
    %c7_i32 = arith.constant 7 : i32
    %197 = vector.broadcast %c7_i32 : i32 to vector<8x32xi32>
    %198 = arith.cmpi sgt, %14, %197 : vector<8x32xi32>
    %199 = arith.select %198, %196, %176 : vector<8x32xi1>, vector<8x32xf32>
    %c0_27 = arith.constant 0 : index
    %c0_28 = arith.constant 0 : index
    %200 = vector.load %arg6[%c0_27, %c0_28] : memref<32x128xf32, #tpu.memory_space<vmem>>, vector<32x128xf32>
    %cst_29 = arith.constant dense<0.000000e+00> : vector<8x128xf32>
    %201 = tpu.matmul %199, %200, %cst_29 {dimension_numbers = #tpu.dot_dimension_numbers<[1], [0], [0], [1], [0, 0, 1, 1], [], []>} : vector<8x32xf32>, vector<32x128xf32>, vector<8x128xf32> -> vector<8x128xf32>
    %c0_30 = arith.constant 0 : index
    %c0_31 = arith.constant 0 : index
    %202 = vector.load %arg7[%c0_30, %c0_31] : memref<1x128xf32, #tpu.memory_space<vmem>>, vector<1x128xf32>
    %203 = vector.broadcast %202 : vector<1x128xf32> to vector<8x128xf32>
    %204 = arith.addf %201, %203 : vector<8x128xf32>
    %c0_32 = arith.constant 0 : index
    %c0_33 = arith.constant 0 : index
    %205 = vector.load %arg8[%c0_32, %c0_33] : memref<8x128xf32, #tpu.memory_space<vmem>>, vector<8x128xf32>
    tpu.vector_store %arg8[%c0_32, %c0_33], %204 {strides = array<i32>} : memref<8x128xf32, #tpu.memory_space<vmem>>, vector<8x128xf32>,
    return
  }
  func.func @transform_0(%arg0: i32) -> (i32, i32) {
    %c0_i32 = arith.constant 0 : i32
    %c0_i32_0 = arith.constant 0 : i32
    %c0_i32_1 = arith.constant 0 : i32
    return %c0_i32, %c0_i32_0 : i32, i32
  }
  func.func @transform_1(%arg0: i32) -> (i32, i32) {
    %c0_i32 = arith.constant 0 : i32
    %c0_i32_0 = arith.constant 0 : i32
    %c0_i32_1 = arith.constant 0 : i32
    return %c0_i32, %c0_i32_0 : i32, i32
  }
  func.func @transform_2(%arg0: i32) -> (i32, i32) {
    %c0_i32 = arith.constant 0 : i32
    %c0_i32_0 = arith.constant 0 : i32
    %c0_i32_1 = arith.constant 0 : i32
    return %c0_i32, %c0_i32_0 : i32, i32
  }
  func.func @transform_3(%arg0: i32) -> (i32, i32) {
    %c0_i32 = arith.constant 0 : i32
    %c0_i32_0 = arith.constant 0 : i32
    %c0_i32_1 = arith.constant 0 : i32
    return %c0_i32, %c0_i32_0 : i32, i32
  }
  func.func @transform_4(%arg0: i32) -> (i32, i32) {
    %c0_i32 = arith.constant 0 : i32
    %c0_i32_0 = arith.constant 0 : i32
    %c0_i32_1 = arith.constant 0 : i32
    return %c0_i32, %c0_i32_0 : i32, i32
  }
  func.func @transform_5(%arg0: i32) -> (i32, i32) {
    %c0_i32 = arith.constant 0 : i32
    %c0_i32_0 = arith.constant 0 : i32
    %c0_i32_1 = arith.constant 0 : i32
    return %c0_i32, %c0_i32_0 : i32, i32
  }
  func.func @transform_6(%arg0: i32) -> (i32, i32) {
    %c0_i32 = arith.constant 0 : i32
    %c0_i32_0 = arith.constant 0 : i32
    %c0_i32_1 = arith.constant 0 : i32
    return %c0_i32, %c0_i32_0 : i32, i32
  }
  func.func @transform_7(%arg0: i32) -> (i32, i32) {
    %c0_i32 = arith.constant 0 : i32
    %c0_i32_0 = arith.constant 0 : i32
    %c0_i32_1 = arith.constant 0 : i32
    return %c0_i32, %c0_i32_0 : i32, i32
  }
}

</mosaic_0001>

<bundles_post_ra>
// kernel: review_classifier_forward.1
= control target key start
LH: loop header
LB: loop body
LE: loop exit
PB: predicated region body
PF: predicated region fallthrough
CT: control target
= control target key end

     0   :  { %12 = vsyncpa [#allocation3], 0  ;;  %s1896_s0 = inlined_call_operand.vmem [shape: s32[64,1], index: 0, kind: input, shape index: {}]   ;;  %s1897_s1 = inlined_call_operand.vmem [shape: f32[56,128], index: 1, kind: input, shape index: {}]   ;;  %s1898_s2 = inlined_call_operand.hbm [shape: f32[1,128], index: 2, kind: input, shape index: {}]   ;;  %s1899_s3 = inlined_call_operand.vmem [shape: f32[32,128], index: 3, kind: input, shape index: {}]   ;;  %s1900_s4 = inlined_call_operand.vmem [shape: s32[8,1], index: 4, kind: input, shape index: {}]   ;;  %s1901_s5 = inlined_call_operand.hbm [shape: f32[32,128], index: 5, kind: input, shape index: {}]   ;;  %s1902_s6 = inlined_call_operand.vmem [shape: f32[1,128], index: 6, kind: input, shape index: {}]   ;;  %s1903_s7 = inlined_call_operand.hbm [shape: f32[8,128], index: 7, kind: output, shape index: {}]  }
   0x1   :  { %13 = vsyncpa [#allocation6], 0 }
   0x2   :  { %14 = vsyncpa [#allocation4], 0  ;;  %s1549_s24 = smov [#allocation2]   ;;  %s1550_s26 = smov [#allocation5]  }
   0x3   :  { %s25_s25 = sshll.u32 %s1549_s24, 4  ;;  %s38_s27 = sshll.u32 %s1550_s26, 4  ;;  %s26_s25 = int_to_ptr.vmem [resolvable:$true] %s25_s25  ;;  %s39_s27 = int_to_ptr.vmem [resolvable:$true] %s38_s27 }
   0x4   :  { %s1491_s28 = scalar_lea.vmem %s26_s25, 16  ;;  %s1495_s29 = scalar_lea.vmem %s26_s25, 32 }
   0x5   :  { %p1492_p0 = scmp.ne.s32.totalorder %s26_s25, %s1491_s28  ;;  %p1496_p1 = scmp.lt.s32.totalorder %s26_s25, %s26_s25 }
   0x6   :  { %p1497_p2 = scmp.lt.s32.totalorder %s1495_s29, %s1491_s28 }
   0x8   :  { %p1498_p3 = por %p1497_p2, %p1496_p1 }
   0xa   :  { %p1499_p4 = pnand %p1498_p3, %p1492_p0 }
   0xc   :  { %1502 = shalt.err (!%p1499_p4)
}
   0xd   :  { %28 = dma.hbm_to_vmem [thread:$0]  %s1898_s2, 16, %s26_s25, [#allocation3]  }
   0xe   :  { %s1511_s9 = scalar_lea.vmem %s39_s27, 512  ;;  %p1516_p6 = scmp.lt.s32.totalorder %s39_s27, %s39_s27 }
   0xf   :  { %p1512_p5 = scmp.ne.s32.totalorder %s39_s27, %s1511_s9  ;;  %p1517_p7 = scmp.lt.s32.totalorder %s1511_s9, %s1511_s9 }
  0x11   :  { %p1518_p8 = por %p1517_p7, %p1516_p6 }
  0x13   :  { %p1519_p9 = pnand %p1518_p8, %p1512_p5 }
  0x15   :  { %1522 = shalt.err (!%p1519_p9)
}
  0x16   :  { %s1551_s10 = smov 128   ;;  %s1552_s11 = smov 8  }
  0x17   :  { %44 = dma.hbm_to_vmem [thread:$0]  %s1901_s5, 512, %s39_s27, [#allocation6], %s1551_s10, %s1551_s10, %s1552_s11  }
  0x18   :  { %1543 = dma.done.wait [#allocation3], 16  }
  0x19   :  { %1544 = vsyncadd [#allocation3], 4294967280 }
  0x1a   :  { %1545 = dma.done.wait [#allocation6], 512  }
  0x1b   :  { %1546 = vsyncadd [#allocation6], 4294966784  ;;  %v1553_v0 = vmov 0   ;;  %v1554_v1 = vmov 0.0   ;;  %v53_v2 = vld [vmem:[%s1896_s0] sm:$0xff]  ;;  %v117_v3 = vld [vmem:[%s1897_s1 + $0x30] sm:$0xff]  ;;  %v61_v16 = vlaneseq }
  0x1c   :  { %1417 = vset.pattern.permute.xlu0 %v1553_v0  ;;  %1418 = vset.pattern.permute.xlu1 %v1553_v0  ;;  %v116_v4 = vld [vmem:[%s1897_s1 + $0x28] sm:$0xff]  ;;  %v1621_v6 = vld [vmem:[%s1899_s3 + $0x18] sm:$0xff]  ;;  %v115_v7 = vld [vmem:[%s1897_s1 + $0x20] sm:$0xff]  ;;  %vm1555_vm0 = vmmov 0   ;;  %vm125_vm1 = vcmask 457728   ;;  %vm263_vm5 = vcmask 261120  }
  0x1d   :  { %1308 = vmatprep.subr.mxu1 %v1554_v1  ;;  %64 = vperm.xlu0 %1417, %v53_v2   ;;  %v54_v5 = vld [vmem:[%s1896_s0 + $0x8] sm:$0xff]  ;;  %v1630_v8 = vld [vmem:[%s1899_s3 + $0x10] sm:$0xff]  ;;  %v114_v9 = vld [vmem:[%s1897_s1 + $0x18] sm:$0xff]  ;;  %v1678_v17 = vand.u32 127, %v61_v16  ;;  %s1558_s27 = smov [#allocation7]  }
  0x1e   :  { %1282 = vmatprep.subr.mxu0 %v117_v3  ;;  %1309 = vmatpush3.msra.mxu1 %v1621_v6  ;;  %v1639_v10 = vld [vmem:[%s1899_s3 + $0x8] sm:$0xff]  ;;  %v259_v11 = vld [vmem:[%s1900_s4] sm:$0xff]  ;;  %v113_v12 = vld [vmem:[%s1897_s1 + $0x10] sm:$0xff]  ;;  %s1178_s28 = sshll.u32 %s1558_s27, 4  ;;  %s1179_s28 = int_to_ptr.vmem [resolvable:$true] %s1178_s28 }
  0x1f   :  { %1283 = vmatpush3.msra.mxu0 %v117_v3  ;;  %1310 = vmatprep.subr.mxu1 %v1554_v1  ;;  %v1653_v13 = vld [vmem:[%s1899_s3] sm:$0xff]  ;;  %v112_v14 = vld [vmem:[%s1897_s1 + $0x8] sm:$0xff]  ;;  %s1557_s3 = smov 64   ;;  %v55_v56 = vld [vmem:[%s1896_s0 + $0x10] sm:$0xff]  ;;  %s1523_s29 = scalar_lea.vmem %s1179_s28, 128 }
  0x20   :  { %1284 = vmatprep.subr.mxu0 %v116_v4  ;;  %1311 = vmatpush3.msra.mxu1 %v1630_v8  ;;  %v111_v15 = vld [vmem:[%s1897_s1] sm:$0xff]  ;;  %s1556_s1 = smov 32   ;;  %v56_v0 = vld [vmem:[%s1896_s0 + $0x18] sm:$0xff]  ;;  %p1524_p10 = scmp.ne.s32.totalorder %s1179_s28, %s1523_s29 }
  0x21   :  { %67 = vperm.xlu0 %1417, %v54_v5   ;;  %1285 = vmatpush3.msra.mxu0 %v116_v4  ;;  %v1694_v25 = vld [vmem:[#allocation2] ss:$0 sm:$0xff]  ;;  %p1528_p11 = scmp.lt.s32.totalorder %s1179_s28, %s1179_s28  ;;  %p1529_p12 = scmp.lt.s32.totalorder %s1523_s29, %s1523_s29 }
  0x22   :  { %1286 = vmatprep.subr.mxu0 %v115_v7  ;;  %1312 = vmatprep.subr.mxu1 %v1554_v1 }
  0x23   :  { %1287 = vmatpush3.msra.mxu0 %v115_v7  ;;  %1313 = vmatpush3.msra.mxu1 %v1639_v10  ;;  %p1530_p13 = por %p1529_p12, %p1528_p11 }
  0x24   :  { %1288 = vmatprep.subr.mxu0 %v114_v9  ;;  %1314 = vmatprep.subr.mxu1 %v1554_v1 }
  0x25   :  { %261 = vperm.xlu0 %1417, %v259_v11   ;;  %1289 = vmatpush3.msra.mxu0 %v114_v9  ;;  %p1531_p0 = pnand %p1530_p13, %p1524_p10 }
  0x26   :  { %1290 = vmatprep.subr.mxu0 %v113_v12  ;;  %1315 = vmatpush3.msra.mxu1 %v1653_v13 }
  0x27   :  { %1291 = vmatpush3.msra.mxu0 %v113_v12  ;;  %1316 = vmatprep.mubr.msk.f32.mxu1 %vm1555_vm0, %v1554_v1 }
  0x28   :  { %1292 = vmatprep.subr.mxu0 %v112_v14  ;;  %1317 = vmatmul.mubr.f32.vlgmr.msra.gmra.mxu1 %v1554_v1 }
  0x29   :  { %1293 = vmatpush3.msra.mxu0 %v112_v14  ;;  %1319 = vmatprep.subr.mxu1 %v1554_v1 }
  0x2a   :  { %1294 = vmatprep.subr.mxu0 %v111_v15  ;;  %1320 = vmatpush3.msra.mxu1 %v1621_v6 }
  0x2b   :  { %1295 = vmatpush3.msra.mxu0 %v111_v15  ;;  %1321 = vmatprep.subr.mxu1 %v1554_v1 }
  0x2c   :  { %1327 = vmatprep.mubr.msk.f32.mxu1 %vm1555_vm0, %v1554_v1  ;;  %1322 = vmatpush3.msra.mxu1 %v1630_v8 }
  0x2d   :  { %1341 = vmatprep.subr.mxu0 %v1554_v1  ;;  %1323 = vmatprep.subr.mxu1 %v1554_v1 }
  0x2e   :  { %1324 = vmatpush3.msra.mxu1 %v1639_v10 }
  0x2f   :  { %1325 = vmatprep.subr.mxu1 %v1554_v1 }
  0x30   :  { %1326 = vmatpush3.msra.mxu1 %v1653_v13 }
  0x31   :  { %1330 = vmatprep.subr.mxu1 %v1554_v1 }
  0x98   :  { %v65_v18 = vpop.permute.xlu0 %64 }
  0x99   :  { %vm87_vm2 = vcmp.eq.s32.totalorder %v1678_v17, %v65_v18 }
  0x9a   :  { %v1188_v19 = vsel %vm87_vm2, 1.0, %v1554_v1 }
  0x9b   :  { %1296 = vmatprep.mubr.msk.f32.mxu0 %vm125_vm1, %v1188_v19 }
  0x9c   :  { %v68_v20 = vpop.permute.xlu0 %67 }
  0x9d   :  { %vm88_vm3 = vcmp.eq.s32.totalorder %v1678_v17, %v68_v20 }
  0x9e   :  { %v1189_v21 = vsel %vm88_vm3, 1.0, %v1554_v1 }
  0x9f   :  { %1297 = vmatmul.mubr.msk.f32.vlgmr.msra.gmra.mxu0 %vm125_vm1, %v1189_v21 }
  0xa0   :  { %1342 = vmatpush3.msra.mxu0 %v1621_v6  ;;  %v1700_v40 = vpop.permute.xlu0 %261 }
  0xa1   :  { %1343 = vmatprep.subr.mxu0 %v1554_v1  ;;  %vm362_vm4 = vcmp.gt.s32.totalorder %v1700_v40, 0  ;;  %vm465_vm7 = vcmp.gt.s32.totalorder %v1700_v40, 1  ;;  %vm568_vm10 = vcmp.gt.s32.totalorder %v1700_v40, 2  ;;  %vm671_vm14 = vcmp.gt.s32.totalorder %v1700_v40, 3 }
  0xa2   :  { %1344 = vmatpush3.msra.mxu0 %v1630_v8  ;;  %vm774_vm15 = vcmp.gt.s32.totalorder %v1700_v40, 4  ;;  %vm1083_vm2 = vcmp.gt.s32.totalorder %v1700_v40, 7 }
  0xa3   :  { %1345 = vmatprep.subr.mxu0 %v1554_v1 }
  0xa4   :  { %1346 = vmatpush3.msra.mxu0 %v1639_v10 }
  0xa5   :  { %1347 = vmatprep.subr.mxu0 %v1554_v1 }
  0xa6   :  { %1348 = vmatpush3.msra.mxu0 %v1653_v13 }
  0xa7   :  { %1363 = vmatprep.subr.mxu0 %v1554_v1 }
  0xe8   :  { %v333_v22 = vpop.f32.mrf.mxu1 }
  0xea   :  { %v1318_v23 = vpop.f32.mrf.mxu1 }
 0x15f   :  { %v1298_v24 = vpop.f32.mrf.mxu0 }
 0x160   :  { %v222_v45 = vadd.f32 %v1298_v24, %v1694_v25 }
 0x161   :  { %v216_v26 = vpop.f32.mrf.mxu0 }
 0x162   :  { %v217_v27 = vadd.f32 %v1694_v25, %v216_v26 }
 0x164   :  { %v337_v28 = vadd.f32 %v333_v22, %v217_v27  ;;  %v57_v27 = vld [vmem:[%s1896_s0 + $0x20] sm:$0xff] }
 0x166   :  { %1419 = vtanh.f32 %v337_v28  ;;  %v1205_v30 = vmul.f32 -1.442695, %v337_v28  ;;  %v59_v28 = vld [vmem:[%s1896_s0 + $0x30] sm:$0xff] }
 0x168   :  { %1421 = vpow2.f32 %v1205_v30 }
 0x173   :  { %v1420_v29 = vpop.eup %1419 }
 0x174   :  { %347 = vrot.lane.b32.xlu1 %v1420_v29, %s1556_s1 }
 0x175   :  { %v1422_v31 = vpop.eup %1421 }
 0x176   :  { %v341_v32 = vadd.f32 1.0, %v1422_v31 }
 0x178   :  { %1423 = vrcp.f32 %v341_v32 }
 0x185   :  { %v1424_v33 = vpop.eup %1423 }
 0x186   :  { %v345_v36 = vmul.f32 0.0, %v1424_v33 }
 0x1e6   :  { %v348_v34 = vpop.permute.xlu1 %347 }
 0x1e7   :  { %v350_v35 = vmul.f32 %v1424_v33, %v348_v34 }
 0x1e9   :  { %352 = vrot.lane.b32.xlu1 %v350_v35, %s1556_s1 }
 0x25b   :  { %v353_v37 = vpop.permute.xlu1 %352 }
 0x25c   :  { %v355_v38 = vadd.f32 %v353_v37, %v345_v36  ;;  %v58_v36 = vld [vmem:[%s1896_s0 + $0x28] sm:$0xff]  ;;  %v60_v37 = vld [vmem:[%s1896_s0 + $0x38] sm:$0xff] }
 0x25e   :  { %1425 = vtanh.f32 %v355_v38  ;;  %v364_v57 = vsel %vm362_vm4, %v355_v38, 0.0 }
 0x26b   :  { %v1426_v39 = vpop.eup %1425 }
 0x26c   :  { %358 = vrot.lane.b32.xlu1 %v1426_v39, %s1556_s1 }
 0x2de   :  { %v359_v41 = vpop.permute.xlu1 %358 }
 0x2df   :  { %v361_v42 = vmul.f32 %v1424_v33, %v359_v41 }
 0x2e1   :  { %v363_v43 = vsel %vm362_vm4, %v361_v42, 0.0 }
 0x2e2   :  { %366 = vrot.lane.b32.xlu0 %v363_v43, %s1557_s3 }
 0x354   :  { %v367_v44 = vpop.permute.xlu0 %366 }
 0x355   :  { %1328 = vmatmul.mubr.msk.f32.vlgmr.msra.gmra.mxu1 %vm263_vm5, %v367_v44 }
 0x356   :  { %1331 = vmatpush3.msra.mxu1 %v1621_v6  ;;  %1338 = vmatprep.mubr.msk.f32.mxu1 %vm1555_vm0, %v1554_v1 }
 0x357   :  { %1332 = vmatprep.subr.mxu1 %v1554_v1 }
 0x358   :  { %1333 = vmatpush3.msra.mxu1 %v1630_v8 }
 0x359   :  { %1334 = vmatprep.subr.mxu1 %v1554_v1 }
 0x35a   :  { %1335 = vmatpush3.msra.mxu1 %v1639_v10 }
 0x35b   :  { %1336 = vmatprep.subr.mxu1 %v1554_v1 }
 0x35c   :  { %1337 = vmatpush3.msra.mxu1 %v1653_v13 }
 0x35d   :  { %1352 = vmatprep.subr.mxu1 %v1554_v1 }
 0x415   :  { %v436_v46 = vpop.f32.mrf.mxu1 }
 0x416   :  { %v440_v47 = vadd.f32 %v436_v46, %v222_v45 }
 0x417   :  { %v1329_v48 = vpop.f32.mrf.mxu1 }
 0x418   :  { %1427 = vtanh.f32 %v440_v47  ;;  %v1207_v50 = vmul.f32 -1.442695, %v440_v47 }
 0x41a   :  { %1429 = vpow2.f32 %v1207_v50 }
 0x425   :  { %v1428_v49 = vpop.eup %1427 }
 0x426   :  { %450 = vrot.lane.b32.xlu1 %v1428_v49, %s1556_s1 }
 0x427   :  { %v1430_v51 = vpop.eup %1429 }
 0x428   :  { %v444_v52 = vadd.f32 1.0, %v1430_v51 }
 0x42a   :  { %1431 = vrcp.f32 %v444_v52 }
 0x437   :  { %v1432_v53 = vpop.eup %1431 }
 0x438   :  { %v448_v58 = vmul.f32 %v1432_v53, %v364_v57 }
 0x498   :  { %v451_v54 = vpop.permute.xlu1 %450 }
 0x499   :  { %v453_v55 = vmul.f32 %v1432_v53, %v451_v54 }
 0x49b   :  { %455 = vrot.lane.b32.xlu0 %v453_v55, %s1556_s1 }
 0x49f   :  { %70 = vperm.xlu0 %1417, %v55_v56  }
 0x50d   :  { %v456_v59 = vpop.permute.xlu0 %455 }
 0x50e   :  { %v458_v60 = vadd.f32 %v456_v59, %v448_v58 }
 0x510   :  { %1433 = vtanh.f32 %v458_v60  ;;  %v1763_v29 = vsel %vm465_vm7, %v458_v60, %v364_v57 }
 0x51a   :  { %v71_v61 = vpop.permute.xlu0 %70 }
 0x51b   :  { %vm89_vm6 = vcmp.eq.s32.totalorder %v1678_v17, %v71_v61 }
 0x51c   :  { %v1190_v62 = vsel %vm89_vm6, 1.0, %v1554_v1 }
 0x51d   :  { %v1434_v63 = vpop.eup %1433  ;;  %1299 = vmatprep.mubr.msk.f32.mxu0 %vm125_vm1, %v1190_v62 }
 0x51e   :  { %461 = vrot.lane.b32.xlu1 %v1434_v63, %s1556_s1 }
 0x522   :  { %73 = vperm.xlu1 %1418, %v56_v0  }
 0x590   :  { %v462_v2 = vpop.permute.xlu1 %461 }
 0x591   :  { %v464_v3 = vmul.f32 %v1432_v53, %v462_v2 }
 0x593   :  { %v466_v4 = vsel %vm465_vm7, %v464_v3, %v363_v43 }
 0x594   :  { %469 = vrot.lane.b32.xlu0 %v466_v4, %s1557_s3 }
 0x59d   :  { %v74_v5 = vpop.permute.xlu1 %73 }
 0x59e   :  { %vm90_vm8 = vcmp.eq.s32.totalorder %v1678_v17, %v74_v5 }
 0x59f   :  { %v1191_v7 = vsel %vm90_vm8, 1.0, %v1554_v1 }
 0x5a0   :  { %1300 = vmatmul.mubr.msk.f32.gmra.mxu0 %vm125_vm1, %v1191_v7 }
 0x606   :  { %v470_v9 = vpop.permute.xlu0 %469 }
 0x607   :  { %1339 = vmatmul.mubr.msk.f32.vlgmr.msra.gmra.mxu1 %vm263_vm5, %v470_v9 }
 0x608   :  { %1353 = vmatpush3.msra.mxu1 %v1621_v6  ;;  %1360 = vmatprep.mubr.msk.f32.mxu1 %vm1555_vm0, %v1554_v1 }
 0x609   :  { %1354 = vmatprep.subr.mxu1 %v1554_v1 }
 0x60a   :  { %1355 = vmatpush3.msra.mxu1 %v1630_v8 }
 0x60b   :  { %1356 = vmatprep.subr.mxu1 %v1554_v1 }
 0x60c   :  { %1357 = vmatpush3.msra.mxu1 %v1639_v10 }
 0x60d   :  { %1358 = vmatprep.subr.mxu1 %v1554_v1 }
 0x60e   :  { %1359 = vmatpush3.msra.mxu1 %v1653_v13 }
 0x60f   :  { %1374 = vmatprep.subr.mxu1 %v1554_v1 }
 0x660   :  { %v1750_v11 = vpop.f32.mrf.mxu0 }
 0x661   :  { %v232_v52 = vadd.f32 %v1750_v11, %v1694_v25 }
 0x662   :  { %v226_v12 = vpop.f32.mrf.mxu0 }
 0x663   :  { %v227_v14 = vadd.f32 %v1694_v25, %v226_v12 }
 0x6c7   :  { %v539_v15 = vpop.f32.mrf.mxu1 }
 0x6c8   :  { %v543_v16 = vadd.f32 %v539_v15, %v227_v14 }
 0x6c9   :  { %v1340_v18 = vpop.f32.mrf.mxu1 }
 0x6ca   :  { %1435 = vtanh.f32 %v543_v16  ;;  %v1209_v20 = vmul.f32 -1.442695, %v543_v16 }
 0x6cc   :  { %1437 = vpow2.f32 %v1209_v20 }
 0x6d7   :  { %v1436_v19 = vpop.eup %1435 }
 0x6d8   :  { %553 = vrot.lane.b32.xlu1 %v1436_v19, %s1556_s1 }
 0x6d9   :  { %v1438_v21 = vpop.eup %1437 }
 0x6da   :  { %v547_v22 = vadd.f32 1.0, %v1438_v21 }
 0x6dc   :  { %1439 = vrcp.f32 %v547_v22 }
 0x6e9   :  { %v1440_v23 = vpop.eup %1439 }
 0x6ea   :  { %v551_v30 = vmul.f32 %v1440_v23, %v1763_v29 }
 0x74a   :  { %v554_v24 = vpop.permute.xlu1 %553 }
 0x74b   :  { %v556_v26 = vmul.f32 %v1440_v23, %v554_v24 }
 0x74d   :  { %558 = vrot.lane.b32.xlu0 %v556_v26, %s1556_s1 }
 0x751   :  { %76 = vperm.xlu0 %1417, %v57_v27  }
 0x755   :  { %82 = vperm.xlu0 %1417, %v59_v28  }
 0x7bf   :  { %v559_v31 = vpop.permute.xlu0 %558 }
 0x7c0   :  { %v561_v32 = vadd.f32 %v559_v31, %v551_v30 }
 0x7c2   :  { %1441 = vtanh.f32 %v561_v32  ;;  %v570_v63 = vsel %vm568_vm10, %v561_v32, %v1763_v29 }
 0x7cc   :  { %v77_v33 = vpop.permute.xlu0 %76 }
 0x7cd   :  { %vm91_vm9 = vcmp.eq.s32.totalorder %v1678_v17, %v77_v33 }
 0x7ce   :  { %v1192_v34 = vsel %vm91_vm9, 1.0, %v1554_v1 }
 0x7cf   :  { %v1442_v35 = vpop.eup %1441  ;;  %1302 = vmatprep.mubr.msk.f32.mxu0 %vm125_vm1, %v1192_v34 }
 0x7d0   :  { %564 = vrot.lane.b32.xlu1 %v1442_v35, %s1556_s1  ;;  %v83_v42 = vpop.permute.xlu0 %82 }
 0x7d1   :  { %vm93_vm11 = vcmp.eq.s32.totalorder %v1678_v17, %v83_v42 }
 0x7d2   :  { %v1194_v45 = vsel %vm93_vm11, 1.0, %v1554_v1 }
 0x7d4   :  { %79 = vperm.xlu1 %1418, %v58_v36  }
 0x7d8   :  { %85 = vperm.xlu1 %1418, %v60_v37  }
 0x842   :  { %v565_v38 = vpop.permute.xlu1 %564 }
 0x843   :  { %v567_v39 = vmul.f32 %v1440_v23, %v565_v38 }
 0x845   :  { %v569_v41 = vsel %vm568_vm10, %v567_v39, %v466_v4 }
 0x846   :  { %572 = vrot.lane.b32.xlu0 %v569_v41, %s1557_s3 }
 0x84f   :  { %v80_v43 = vpop.permute.xlu1 %79 }
 0x850   :  { %vm92_vm12 = vcmp.eq.s32.totalorder %v1678_v17, %v80_v43 }
 0x851   :  { %v1193_v44 = vsel %vm92_vm12, 1.0, %v1554_v1 }
 0x852   :  { %1303 = vmatmul.mubr.msk.f32.gmra.mxu0 %vm125_vm1, %v1193_v44 }
 0x853   :  { %1305 = vmatprep.mubr.msk.f32.mxu0 %vm125_vm1, %v1194_v45  ;;  %v86_v46 = vpop.permute.xlu1 %85 }
 0x854   :  { %vm94_vm13 = vcmp.eq.s32.totalorder %v1678_v17, %v86_v46 }
 0x855   :  { %v1195_v47 = vsel %vm94_vm13, 1.0, %v1554_v1 }
 0x856   :  { %1306 = vmatmul.mubr.msk.f32.gmra.mxu0 %vm125_vm1, %v1195_v47  ;;  %vm877_vm1 = vcmp.gt.s32.totalorder %v1700_v40, 5 }
 0x857   :  { %1349 = vmatprep.mubr.msk.f32.mxu0 %vm1555_vm0, %v1554_v1 }
 0x8b8   :  { %v573_v48 = vpop.permute.xlu0 %572 }
 0x8b9   :  { %1350 = vmatmul.mubr.msk.f32.vlgmr.msra.gmra.mxu0 %vm263_vm5, %v573_v48 }
 0x8ba   :  { %1364 = vmatpush3.msra.mxu0 %v1621_v6  ;;  %1371 = vmatprep.mubr.msk.f32.mxu0 %vm1555_vm0, %v1554_v1 }
 0x8bb   :  { %1365 = vmatprep.subr.mxu0 %v1554_v1 }
 0x8bc   :  { %1366 = vmatpush3.msra.mxu0 %v1630_v8 }
 0x8bd   :  { %1367 = vmatprep.subr.mxu0 %v1554_v1 }
 0x8be   :  { %1368 = vmatpush3.msra.mxu0 %v1639_v10 }
 0x8bf   :  { %1369 = vmatprep.subr.mxu0 %v1554_v1 }
 0x8c0   :  { %1370 = vmatpush3.msra.mxu0 %v1653_v13 }
 0x8c1   :  { %1385 = vmatprep.subr.mxu0 %v1554_v1 }
 0x912   :  { %v1802_v17 = vpop.f32.mrf.mxu0 }
 0x913   :  { %v242_v35 = vadd.f32 %v1802_v17, %v1694_v25 }
 0x914   :  { %v236_v49 = vpop.f32.mrf.mxu0 }
 0x915   :  { %v237_v12 = vadd.f32 %v1694_v25, %v236_v49 }
 0x916   :  { %v1804_v50 = vpop.f32.mrf.mxu0 }
 0x918   :  { %v1806_v51 = vpop.f32.mrf.mxu0 }
 0x979   :  { %v642_v53 = vpop.f32.mrf.mxu0 }
 0x97a   :  { %v646_v54 = vadd.f32 %v642_v53, %v232_v52  ;;  %v247_v53 = vadd.f32 %v1694_v25, %v1806_v51 }
 0x97b   :  { %v1351_v55 = vpop.f32.mrf.mxu0 }
 0x97c   :  { %1443 = vtanh.f32 %v646_v54  ;;  %v1211_v57 = vmul.f32 -1.442695, %v646_v54 }
 0x97e   :  { %1445 = vpow2.f32 %v1211_v57 }
 0x989   :  { %v1444_v56 = vpop.eup %1443 }
 0x98a   :  { %656 = vrot.lane.b32.xlu1 %v1444_v56, %s1556_s1 }
 0x98b   :  { %v1446_v58 = vpop.eup %1445 }
 0x98c   :  { %v650_v59 = vadd.f32 1.0, %v1446_v58 }
 0x98e   :  { %1447 = vrcp.f32 %v650_v59 }
 0x99b   :  { %v1448_v60 = vpop.eup %1447 }
 0x99c   :  { %v654_v0 = vmul.f32 %v1448_v60, %v570_v63 }
 0x9fc   :  { %v657_v61 = vpop.permute.xlu1 %656 }
 0x9fd   :  { %v659_v62 = vmul.f32 %v1448_v60, %v657_v61 }
 0x9ff   :  { %661 = vrot.lane.b32.xlu0 %v659_v62, %s1556_s1 }
 0xa71   :  { %v662_v2 = vpop.permute.xlu0 %661 }
 0xa72   :  { %v664_v3 = vadd.f32 %v662_v2, %v654_v0 }
 0xa74   :  { %1449 = vtanh.f32 %v664_v3  ;;  %v673_v26 = vsel %vm671_vm14, %v664_v3, %v570_v63 }
 0xa81   :  { %v1450_v4 = vpop.eup %1449 }
 0xa82   :  { %667 = vrot.lane.b32.xlu1 %v1450_v4, %s1556_s1 }
 0xaf4   :  { %v668_v5 = vpop.permute.xlu1 %667 }
 0xaf5   :  { %v670_v7 = vmul.f32 %v1448_v60, %v668_v5 }
 0xaf7   :  { %v672_v9 = vsel %vm671_vm14, %v670_v7, %v569_v41 }
 0xaf8   :  { %675 = vrot.lane.b32.xlu0 %v672_v9, %s1557_s3 }
 0xb6a   :  { %v676_v11 = vpop.permute.xlu0 %675 }
 0xb6b   :  { %1361 = vmatmul.mubr.msk.f32.vlgmr.msra.gmra.mxu1 %vm263_vm5, %v676_v11 }
 0xb6c   :  { %1375 = vmatpush3.msra.mxu1 %v1621_v6  ;;  %1382 = vmatprep.mubr.msk.f32.mxu1 %vm1555_vm0, %v1554_v1 }
 0xb6d   :  { %1376 = vmatprep.subr.mxu1 %v1554_v1 }
 0xb6e   :  { %1377 = vmatpush3.msra.mxu1 %v1630_v8 }
 0xb6f   :  { %1378 = vmatprep.subr.mxu1 %v1554_v1 }
 0xb70   :  { %1379 = vmatpush3.msra.mxu1 %v1639_v10 }
 0xb71   :  { %1380 = vmatprep.subr.mxu1 %v1554_v1 }
 0xb72   :  { %1381 = vmatpush3.msra.mxu1 %v1653_v13 }
 0xb73   :  { %1396 = vmatprep.subr.mxu1 %v1554_v1 }
 0xc2b   :  { %v745_v14 = vpop.f32.mrf.mxu1 }
 0xc2c   :  { %v749_v15 = vadd.f32 %v745_v14, %v237_v12  ;;  %v252_v12 = vadd.f32 %v1804_v50, %v1694_v25 }
 0xc2d   :  { %v1362_v16 = vpop.f32.mrf.mxu1 }
 0xc2e   :  { %1451 = vtanh.f32 %v749_v15  ;;  %v1213_v19 = vmul.f32 -1.442695, %v749_v15 }
 0xc30   :  { %1453 = vpow2.f32 %v1213_v19 }
 0xc3b   :  { %v1452_v18 = vpop.eup %1451 }
 0xc3c   :  { %759 = vrot.lane.b32.xlu1 %v1452_v18, %s1556_s1 }
 0xc3d   :  { %v1454_v20 = vpop.eup %1453 }
 0xc3e   :  { %v753_v21 = vadd.f32 1.0, %v1454_v20 }
 0xc40   :  { %1455 = vrcp.f32 %v753_v21 }
 0xc4d   :  { %v1456_v22 = vpop.eup %1455 }
 0xc4e   :  { %v757_v27 = vmul.f32 %v1456_v22, %v673_v26 }
 0xcae   :  { %v760_v23 = vpop.permute.xlu1 %759 }
 0xcaf   :  { %v762_v24 = vmul.f32 %v1456_v22, %v760_v23 }
 0xcb1   :  { %764 = vrot.lane.b32.xlu0 %v762_v24, %s1556_s1 }
 0xd23   :  { %v765_v28 = vpop.permute.xlu0 %764 }
 0xd24   :  { %v767_v29 = vadd.f32 %v765_v28, %v757_v27  ;;  %v1088_v28 = vld [vmem:[#allocation5 + $0x18] sm:$0xff] }
 0xd26   :  { %1457 = vtanh.f32 %v767_v29 }
 0xd33   :  { %v1458_v30 = vpop.eup %1457 }
 0xd34   :  { %770 = vrot.lane.b32.xlu1 %v1458_v30, %s1556_s1  ;;  %v1086_v30 = vld [vmem:[#allocation5 + $0x8] sm:$0xff] }
 0xda6   :  { %v771_v31 = vpop.permute.xlu1 %770 }
 0xda7   :  { %v773_v32 = vmul.f32 %v1456_v22, %v771_v31  ;;  %v1085_v31 = vld [vmem:[#allocation5] sm:$0xff] }
 0xda9   :  { %v775_v33 = vsel %vm774_vm15, %v773_v32, %v672_v9 }
 0xdaa   :  { %778 = vrot.lane.b32.xlu0 %v775_v33, %s1557_s3 }
 0xe1c   :  { %v779_v34 = vpop.permute.xlu0 %778 }
 0xe1d   :  { %1372 = vmatmul.mubr.msk.f32.vlgmr.msra.gmra.mxu0 %vm263_vm5, %v779_v34 }
 0xe1e   :  { %1386 = vmatpush3.msra.mxu0 %v1621_v6  ;;  %1393 = vmatprep.mubr.msk.f32.mxu0 %vm1555_vm0, %v1554_v1 }
 0xe1f   :  { %1387 = vmatprep.subr.mxu0 %v1554_v1 }
 0xe20   :  { %1388 = vmatpush3.msra.mxu0 %v1630_v8 }
 0xe21   :  { %1389 = vmatprep.subr.mxu0 %v1554_v1 }
 0xe22   :  { %1390 = vmatpush3.msra.mxu0 %v1639_v10 }
 0xe23   :  { %1391 = vmatprep.subr.mxu0 %v1554_v1 }
 0xe24   :  { %1392 = vmatpush3.msra.mxu0 %v1653_v13  ;;  %v776_v13 = vsel %vm774_vm15, %v767_v29, %v673_v26  ;;  %v1087_v29 = vld [vmem:[#allocation5 + $0x10] sm:$0xff] }
 0xedd   :  { %v848_v36 = vpop.f32.mrf.mxu0 }
 0xede   :  { %v852_v6 = vadd.f32 %v848_v36, %v242_v35 }
 0xedf   :  { %v1373_v37 = vpop.f32.mrf.mxu0 }
 0xee0   :  { %1459 = vtanh.f32 %v852_v6  ;;  %v1215_v39 = vmul.f32 -1.442695, %v852_v6  ;;  %v1220_v6 = vld [vmem:[%s1902_s6] ss:$0 sm:$0xff] }
 0xee2   :  { %1461 = vpow2.f32 %v1215_v39 }
 0xeed   :  { %v1460_v38 = vpop.eup %1459 }
 0xeee   :  { %862 = vrot.lane.b32.xlu1 %v1460_v38, %s1556_s1 }
 0xeef   :  { %v1462_v8 = vpop.eup %1461 }
 0xef0   :  { %v856_v41 = vadd.f32 1.0, %v1462_v8 }
 0xef2   :  { %1463 = vrcp.f32 %v856_v41 }
 0xeff   :  { %v1464_v10 = vpop.eup %1463 }
 0xf00   :  { %v860_v44 = vmul.f32 %v1464_v10, %v776_v13 }
 0xf60   :  { %v863_v42 = vpop.permute.xlu1 %862 }
 0xf61   :  { %v865_v43 = vmul.f32 %v1464_v10, %v863_v42 }
 0xf63   :  { %867 = vrot.lane.b32.xlu0 %v865_v43, %s1556_s1 }
 0xfd5   :  { %v868_v45 = vpop.permute.xlu0 %867 }
 0xfd6   :  { %v870_v46 = vadd.f32 %v868_v45, %v860_v44 }
 0xfd8   :  { %1465 = vtanh.f32 %v870_v46  ;;  %v879_v51 = vsel %vm877_vm1, %v870_v46, %v776_v13 }
 0xfe5   :  { %v1466_v47 = vpop.eup %1465 }
 0xfe6   :  { %873 = vrot.lane.b32.xlu1 %v1466_v47, %s1556_s1 }
0x1058   :  { %v874_v48 = vpop.permute.xlu1 %873 }
0x1059   :  { %v876_v17 = vmul.f32 %v1464_v10, %v874_v48 }
0x105b   :  { %v878_v49 = vsel %vm877_vm1, %v876_v17, %v775_v33 }
0x105c   :  { %881 = vrot.lane.b32.xlu0 %v878_v49, %s1557_s3 }
0x10ce   :  { %v882_v52 = vpop.permute.xlu0 %881 }
0x10cf   :  { %1383 = vmatmul.mubr.msk.f32.vlgmr.msra.gmra.mxu1 %vm263_vm5, %v882_v52 }
0x10d0   :  { %1404 = vmatprep.mubr.msk.f32.mxu1 %vm1555_vm0, %v1554_v1  ;;  %vm980_vm0 = vcmp.gt.s32.totalorder %v1700_v40, 6  ;;  %1397 = vmatpush3.msra.mxu1 %v1088_v28 }
0x10d1   :  { %1398 = vmatprep.subr.mxu1 %v1554_v1 }
0x10d2   :  { %1399 = vmatpush3.msra.mxu1 %v1087_v29 }
0x10d3   :  { %1400 = vmatprep.subr.mxu1 %v1554_v1 }
0x10d4   :  { %1401 = vmatpush3.msra.mxu1 %v1086_v30 }
0x10d5   :  { %1402 = vmatprep.subr.mxu1 %v1554_v1 }
0x10d6   :  { %1403 = vmatpush3.msra.mxu1 %v1085_v31 }
0x118f   :  { %v951_v54 = vpop.f32.mrf.mxu1 }
0x1190   :  { %v955_v55 = vadd.f32 %v951_v54, %v247_v53 }
0x1191   :  { %v1384_v56 = vpop.f32.mrf.mxu1 }
0x1192   :  { %1467 = vtanh.f32 %v955_v55  ;;  %v1217_v58 = vmul.f32 -1.442695, %v955_v55 }
0x1194   :  { %1469 = vpow2.f32 %v1217_v58 }
0x119f   :  { %v1468_v57 = vpop.eup %1467 }
0x11a0   :  { %965 = vrot.lane.b32.xlu1 %v1468_v57, %s1556_s1 }
0x11a1   :  { %v1470_v59 = vpop.eup %1469 }
0x11a2   :  { %v959_v60 = vadd.f32 1.0, %v1470_v59 }
0x11a4   :  { %1471 = vrcp.f32 %v959_v60 }
0x11b1   :  { %v1472_v61 = vpop.eup %1471 }
0x11b2   :  { %v963_v0 = vmul.f32 %v1472_v61, %v879_v51 }
0x1212   :  { %v966_v62 = vpop.permute.xlu1 %965 }
0x1213   :  { %v968_v63 = vmul.f32 %v1472_v61, %v966_v62 }
0x1215   :  { %970 = vrot.lane.b32.xlu0 %v968_v63, %s1556_s1 }
0x1287   :  { %v971_v2 = vpop.permute.xlu0 %970 }
0x1288   :  { %v973_v3 = vadd.f32 %v971_v2, %v963_v0 }
0x128a   :  { %1473 = vtanh.f32 %v973_v3  ;;  %v982_v25 = vsel %vm980_vm0, %v973_v3, %v879_v51 }
0x1297   :  { %v1474_v4 = vpop.eup %1473 }
0x1298   :  { %976 = vrot.lane.b32.xlu1 %v1474_v4, %s1556_s1 }
0x130a   :  { %v977_v5 = vpop.permute.xlu1 %976 }
0x130b   :  { %v979_v7 = vmul.f32 %v1472_v61, %v977_v5 }
0x130d   :  { %v981_v9 = vsel %vm980_vm0, %v979_v7, %v878_v49 }
0x130e   :  { %984 = vrot.lane.b32.xlu0 %v981_v9, %s1557_s3 }
0x1380   :  { %v985_v11 = vpop.permute.xlu0 %984 }
0x1381   :  { %1394 = vmatmul.mubr.msk.f32.vlgmr.msra.gmra.mxu0 %vm263_vm5, %v985_v11 }
0x1441   :  { %v1054_v14 = vpop.f32.mrf.mxu0 }
0x1442   :  { %v1058_v15 = vadd.f32 %v1054_v14, %v252_v12 }
0x1443   :  { %v1395_v16 = vpop.f32.mrf.mxu0 }
0x1444   :  { %1475 = vtanh.f32 %v1058_v15  ;;  %v1219_v19 = vmul.f32 -1.442695, %v1058_v15 }
0x1446   :  { %1477 = vpow2.f32 %v1219_v19 }
0x1451   :  { %v1476_v18 = vpop.eup %1475 }
0x1452   :  { %1068 = vrot.lane.b32.xlu1 %v1476_v18, %s1556_s1 }
0x1453   :  { %v1478_v20 = vpop.eup %1477 }
0x1454   :  { %v1062_v21 = vadd.f32 1.0, %v1478_v20 }
0x1456   :  { %1479 = vrcp.f32 %v1062_v21 }
0x1463   :  { %v1480_v22 = vpop.eup %1479 }
0x1464   :  { %v1066_v50 = vmul.f32 %v1480_v22, %v982_v25 }
0x14c4   :  { %v1069_v23 = vpop.permute.xlu1 %1068 }
0x14c5   :  { %v1071_v24 = vmul.f32 %v1480_v22, %v1069_v23 }
0x14c7   :  { %1073 = vrot.lane.b32.xlu0 %v1071_v24, %s1556_s1 }
0x1539   :  { %v1074_v26 = vpop.permute.xlu0 %1073 }
0x153a   :  { %v1076_v27 = vadd.f32 %v1074_v26, %v1066_v50 }
0x153c   :  { %1481 = vtanh.f32 %v1076_v27 }
0x1549   :  { %v1482_v32 = vpop.eup %1481 }
0x154a   :  { %1079 = vrot.lane.b32.xlu1 %v1482_v32, %s1556_s1 }
0x15bc   :  { %v1080_v33 = vpop.permute.xlu1 %1079 }
0x15bd   :  { %v1082_v34 = vmul.f32 %v1480_v22, %v1080_v33 }
0x15bf   :  { %v1084_v35 = vsel %vm1083_vm2, %v1082_v34, %v981_v9 }
0x15c0   :  { %1097 = vrot.lane.b32.xlu0 %v1084_v35, %s1557_s3 }
0x1632   :  { %v1098_v36 = vpop.permute.xlu0 %1097 }
0x1633   :  { %1405 = vmatmul.mubr.msk.f32.vlgmr.msra.gmra.mxu1 %vm263_vm5, %v1098_v36 }
0x16f3   :  { %v1167_v1 = vpop.f32.mrf.mxu1 }
0x16f4   :  { %v1168_v37 = vadd.f32 %v1220_v6, %v1167_v1 }
0x16f5   :  { %v1406_v38 = vpop.f32.mrf.mxu1 }
0x16f6   :  { %1171 = vst [vmem:[#allocation7] sm:$0xff] %v1168_v37 }
0x16f7   :  { %1534 = shalt.err (!%p1531_p0)
}
0x16f8   :  { %1181 = dma.vmem_to_hbm [thread:$0]  %s1179_s28, 128, %s1903_s7, [#allocation4]  }
0x16f9   :  { %1547 = dma.done.wait [#allocation4], 128  }
0x16fa   :  { %1548 = vsyncadd [#allocation4], 4294967168 }
0x16fb   :  { %1185 = vsyncpa [#allocation3], 1 }
0x16fc   :  { %1186 = vsyncpa [#allocation6], 1 }
0x16fd   :  { %1187 = vsyncpa [#allocation4], 1 }

</bundles_post_ra>
